<compile_context>
chip_gen: v7x
topology: tpu7x:2x2x1
jax: 0.10.0
libtpu: 0.0.40
codegen_flags: <defaults>
</compile_context>

<pallas_src>
import functools

import jax
import jax.numpy as jnp
from jax import lax
from jax.experimental import pallas as pl
from jax.experimental.pallas import tpu as pltpu


def _conv3x3_bn_relu_kernel(x_ref, w_ref, bias_ref, o_ref, *, wp, m, nb):
    """Fused 3x3 conv (stride 1, pad 1) + folded BN + ReLU for Nb images.

    x_ref:    (Nb, Cin, Hp*Wp)  zero-padded images, spatial flattened on lanes (bf16)
    w_ref:    (Cout, 9*Cin)     BN-scale-folded conv taps, row = tap*Cin + cin (bf16)
    bias_ref: (Cout, 1)         folded bias = beta + (conv_b - mean) * scale (f32)
    o_ref:    (Nb, Cout, H*Wp)  output (junk lanes at j >= W sliced off by caller, f32)
    """
    w = w_ref[...]                     # (Cout, 9*Cin) bf16, resident for the whole block
    bias = bias_ref[...]               # (Cout, 1) f32

    for b in range(nb):                # static unroll over images in this grid step
        x = x_ref[b]                   # (Cin, Hp*Wp) bf16
        # Build the stacked operand: 9 lane-shifted contiguous views concatenated
        # along sublanes -> (9*Cin, M).  Offsets never touch the contraction axis.
        # (At much larger Cin*M, route the shifts through pltpu.roll / a VMEM
        #  scratch to bound live temporaries; unnecessary at these sizes.)
        taps = []
        for tap in range(9):
            di, dj = divmod(tap, 3)
            off = di * wp + dj         # static lane offset
            taps.append(x[:, off:off + m])
        x_stack = jnp.concatenate(taps, axis=0)          # (9*Cin, M) bf16

        # Single MXU pass, K = 9*Cin, bf16 operands, f32 accumulation.
        acc = jnp.dot(w, x_stack, preferred_element_type=jnp.float32)  # (Cout, M)

        o_ref[b] = jnp.maximum(acc + bias, 0.0).astype(o_ref.dtype)


def _choose_images_per_step(n, per_image_bytes, target_bytes=2 << 20):
    """Largest divisor of n with per-step input <= target_bytes, keeping >= 2
    grid steps when n >= 2 (v7x shards the "parallel" axis across 2 TCs)."""
    best = 1
    for nb in range(1, n + 1):
        if n % nb:
            continue
        if nb * per_image_bytes > target_bytes:
            break
        if n >= 2 and n // nb < 2:
            continue
        best = nb
    return best


@jax.jit
def node_conv_forward(x, conv_w, conv_b, bn_gamma, bn_beta, bn_mean, bn_var,
                      eps=1e-5):
    """x: (N, C, H, W) NCHW -> ReLU(BN(Conv3x3(x))), inference-mode BN."""
    N, Cin, H, W = x.shape
    Cout = conv_w.shape[0]
    Hp, Wp = H + 3, W + 2     # pad: top 1, bottom 2 (slack for tap offsets), left/right 1
    M = H * Wp                # flattened output length per image (junk cols at j >= W)

    # Invariant that makes the flattened-row trick safe: the furthest tap view
    # (offset 2*Wp + 2, length M) must stay inside the padded plane.
    assert 2 * Wp + 2 + M <= Hp * Wp, "tap slices would run out of bounds"

    # Zero-pad, flatten spatial dims onto the lane axis, cast to bf16 (single
    # bf16 MXU pass, f32 accumulate; halves the kernel's HBM/VMEM traffic).
    xp = jnp.pad(x, ((0, 0), (0, 0), (1, 2), (1, 1)))
    x_flat = xp.reshape(N, Cin, Hp * Wp).astype(jnp.bfloat16)

    # TODO(synk): BatchNorm uses running statistics (inference mode), folded into
    # the conv weights/bias; training-mode batch statistics are not computed.
    scale = bn_gamma.astype(jnp.float32) / jnp.sqrt(bn_var.astype(jnp.float32) + eps)
    bias = (bn_beta.astype(jnp.float32)
            + (conv_b.astype(jnp.float32) - bn_mean.astype(jnp.float32)) * scale)
    # Fold BN scale into the conv weights (exact), then lay out tap-major rows:
    # (Cout, Cin, 3, 3) -> (Cout, 3, 3, Cin) -> (Cout, 9*Cin), row = tap*Cin + cin.
    w_folded = conv_w.astype(jnp.float32) * scale[:, None, None, None]
    w2 = jnp.transpose(w_folded, (0, 2, 3, 1)).reshape(Cout, 9 * Cin)
    w2 = w2.astype(jnp.bfloat16)
    bias2 = bias.reshape(Cout, 1)

    # Batch several images per grid step so each step is not step-overhead bound.
    per_image_bytes = Cin * Hp * Wp * 2            # bf16 input bytes per image
    Nb = _choose_images_per_step(N, per_image_bytes)
    grid = (N // Nb,)

    kernel = functools.partial(_conv3x3_bn_relu_kernel, wp=Wp, m=M, nb=Nb)

    out_flat = pl.pallas_call(
        kernel,
        out_shape=jax.ShapeDtypeStruct((N, Cout, M), x.dtype),
        grid_spec=pltpu.PrefetchScalarGridSpec(
            num_scalar_prefetch=0,
            grid=grid,
            in_specs=[
                pl.BlockSpec((Nb, Cin, Hp * Wp), lambda n: (n, 0, 0)),
                pl.BlockSpec((Cout, 9 * Cin), lambda n: (0, 0)),
                pl.BlockSpec((Cout, 1), lambda n: (0, 0)),
            ],
            out_specs=pl.BlockSpec((Nb, Cout, M), lambda n: (n, 0, 0)),
        ),
        compiler_params=pltpu.CompilerParams(
            dimension_semantics=("parallel",),
            vmem_limit_bytes=32 * 1024 * 1024,
        ),
    )(x_flat, w2, bias2)

    # Drop the junk columns (j >= W) introduced by the flattened-row trick.
    # In a full NAS cell the padded/flattened layout should instead flow directly
    # into the consuming node to avoid this extra HBM round trip.
    out = out_flat.reshape(N, Cout, H, Wp)[:, :, :, :W]
    return out


def _reference_node_conv(x, conv_w, conv_b, gamma, beta, mean, var, eps=1e-5):
    """Pure-JAX reference: Conv2d(3x3, s1, p1) + BatchNorm2d(eval) + ReLU."""
    y = lax.conv_general_dilated(
        x, conv_w,
        window_strides=(1, 1),
        padding=((1, 1), (1, 1)),
        dimension_numbers=("NCHW", "OIHW", "NCHW"),
        precision=lax.Precision.HIGHEST,
    )
    y = y + conv_b[None, :, None, None]
    y = (y - mean[None, :, None, None]) / jnp.sqrt(var[None, :, None, None] + eps)
    y = y * gamma[None, :, None, None] + beta[None, :, None, None]
    return jnp.maximum(y, 0.0)


if __name__ == "__main__":
    key = jax.random.PRNGKey(0)
    kx, kw, kg, km, kv = jax.random.split(key, 5)

    N, C, H, W = 2, 4, 16, 16
    x = jax.random.normal(kx, (N, C, H, W), dtype=jnp.float32)
    # init_weights(): kaiming-normal conv weight, zero conv bias,
    # bn.weight ~ N(1, 0.02), bn.bias = 0; use non-trivial running stats.
    conv_w = jax.random.normal(kw, (C, C, 3, 3), dtype=jnp.float32) * jnp.sqrt(2.0 / (C * 9))
    conv_b = jnp.zeros((C,), jnp.float32)
    gamma = 1.0 + 0.02 * jax.random.normal(kg, (C,), dtype=jnp.float32)
    beta = jnp.zeros((C,), jnp.float32)
    mean = 0.1 * jax.random.normal(km, (C,), dtype=jnp.float32)
    var = jax.random.uniform(kv, (C,), dtype=jnp.float32, minval=0.5, maxval=1.5)

    y = node_conv_forward(x, conv_w, conv_b, gamma, beta, mean, var)
    y = jax.block_until_ready(y)

    y_ref = _reference_node_conv(x, conv_w, conv_b, gamma, beta, mean, var)
    assert y.shape == (N, C, H, W)
    # Tolerance reflects bf16 MXU operands (single-pass, f32 accumulation) vs the
    # HIGHEST-precision f32 reference.
    assert jnp.allclose(y, y_ref, atol=5e-2, rtol=5e-2), (
        "mismatch vs reference conv+bn+relu, max abs diff = "
        f"{float(jnp.max(jnp.abs(y - y_ref)))}")

    print("KERNEL_OK")
</pallas_src>

<mosaic_0001>
module attributes {stable_mosaic.version = 11 : i64} {
  func.func @_conv3x3_bn_relu_kernel(%arg0: i32, %arg1: memref<1x4x342xbf16, #tpu.memory_space<vmem>>, %arg2: memref<4x36xbf16, #tpu.memory_space<vmem>>, %arg3: memref<4x1xf32, #tpu.memory_space<vmem>>, %arg4: memref<1x4x288xf32, #tpu.memory_space<vmem>>) attributes {dimension_semantics = [#tpu.dimension_semantics<parallel>], iteration_bounds = array<i64: 2>, scalar_prefetch = 0 : i64, scratch_operands = 0 : i64, tpu.core_type = #tpu.core_type<tc>, window_params = [{transform_indices = @transform_0, window_bounds = array<i64: 1, 4, 342>}, {pipeline_mode = #tpu.pipeline_mode<synchronous>, transform_indices = @transform_1, window_bounds = array<i64: 4, 36>}, {pipeline_mode = #tpu.pipeline_mode<synchronous>, transform_indices = @transform_2, window_bounds = array<i64: 4, 1>}, {transform_indices = @transform_3, window_bounds = array<i64: 1, 4, 288>}]} {
    %c0 = arith.constant 0 : index
    %c0_0 = arith.constant 0 : index
    %0 = vector.load %arg2[%c0, %c0_0] : memref<4x36xbf16, #tpu.memory_space<vmem>>, vector<4x36xbf16>
    %c0_1 = arith.constant 0 : index
    %c0_2 = arith.constant 0 : index
    %1 = vector.load %arg3[%c0_1, %c0_2] : memref<4x1xf32, #tpu.memory_space<vmem>>, vector<4x1xf32>
    %c0_3 = arith.constant 0 : index
    %c0_4 = arith.constant 0 : index
    %c0_5 = arith.constant 0 : index
    %2 = vector.load %arg1[%c0_3, %c0_4, %c0_5] : memref<1x4x342xbf16, #tpu.memory_space<vmem>>, vector<1x4x342xbf16>
    %3 = vector.shape_cast %2 : vector<1x4x342xbf16> to vector<4x342xbf16>
    %4 = vector.extract_strided_slice %3 {offsets = [0, 0], sizes = [4, 288], strides = [1, 1]} : vector<4x342xbf16> to vector<4x288xbf16>
    %5 = vector.extract_strided_slice %3 {offsets = [0, 1], sizes = [4, 288], strides = [1, 1]} : vector<4x342xbf16> to vector<4x288xbf16>
    %6 = vector.extract_strided_slice %3 {offsets = [0, 2], sizes = [4, 288], strides = [1, 1]} : vector<4x342xbf16> to vector<4x288xbf16>
    %7 = vector.extract_strided_slice %3 {offsets = [0, 18], sizes = [4, 288], strides = [1, 1]} : vector<4x342xbf16> to vector<4x288xbf16>
    %8 = vector.extract_strided_slice %3 {offsets = [0, 19], sizes = [4, 288], strides = [1, 1]} : vector<4x342xbf16> to vector<4x288xbf16>
    %9 = vector.extract_strided_slice %3 {offsets = [0, 20], sizes = [4, 288], strides = [1, 1]} : vector<4x342xbf16> to vector<4x288xbf16>
    %10 = vector.extract_strided_slice %3 {offsets = [0, 36], sizes = [4, 288], strides = [1, 1]} : vector<4x342xbf16> to vector<4x288xbf16>
    %11 = vector.extract_strided_slice %3 {offsets = [0, 37], sizes = [4, 288], strides = [1, 1]} : vector<4x342xbf16> to vector<4x288xbf16>
    %12 = vector.extract_strided_slice %3 {offsets = [0, 38], sizes = [4, 288], strides = [1, 1]} : vector<4x342xbf16> to vector<4x288xbf16>
    %13 = tpu.concatenate %4, %5, %6, %7, %8, %9, %10, %11, %12 in 0 : vector<4x288xbf16>, vector<4x288xbf16>, vector<4x288xbf16>, vector<4x288xbf16>, vector<4x288xbf16>, vector<4x288xbf16>, vector<4x288xbf16>, vector<4x288xbf16>, vector<4x288xbf16> -> vector<36x288xbf16>
    %cst = arith.constant dense<0.000000e+00> : vector<4x288xf32>
    %14 = tpu.matmul %0, %13, %cst {dimension_numbers = #tpu.dot_dimension_numbers<[1], [0], [0], [1], [0, 0, 1, 1], [], []>} : vector<4x36xbf16>, vector<36x288xbf16>, vector<4x288xf32> -> vector<4x288xf32>
    %15 = vector.broadcast %1 : vector<4x1xf32> to vector<4x288xf32>
    %16 = arith.addf %14, %15 : vector<4x288xf32>
    %cst_6 = arith.constant 0.000000e+00 : f32
    %17 = vector.broadcast %cst_6 : f32 to vector<4x288xf32>
    %18 = arith.maximumf %16, %17 : vector<4x288xf32>
    %c0_7 = arith.constant 0 : index
    %c0_8 = arith.constant 0 : index
    %c0_9 = arith.constant 0 : index
    %19 = vector.load %arg4[%c0_7, %c0_8, %c0_9] : memref<1x4x288xf32, #tpu.memory_space<vmem>>, vector<1x4x288xf32>
    %20 = vector.shape_cast %19 : vector<1x4x288xf32> to vector<4x288xf32>
    %21 = vector.shape_cast %18 : vector<4x288xf32> to vector<1x4x288xf32>
    tpu.vector_store %arg4[%c0_7, %c0_8, %c0_9], %21 {strides = array<i32>} : memref<1x4x288xf32, #tpu.memory_space<vmem>>, vector<1x4x288xf32>,
    return
  }
  func.func @transform_0(%arg0: i32) -> (i32, i32, i32) {
    %c0_i32 = arith.constant 0 : i32
    %c0_i32_0 = arith.constant 0 : i32
    %c0_i32_1 = arith.constant 0 : i32
    return %arg0, %c0_i32, %c0_i32_0 : i32, i32, i32
  }
  func.func @transform_1(%arg0: i32) -> (i32, i32) {
    %c0_i32 = arith.constant 0 : i32
    %c0_i32_0 = arith.constant 0 : i32
    %c0_i32_1 = arith.constant 0 : i32
    return %c0_i32, %c0_i32_0 : i32, i32
  }
  func.func @transform_2(%arg0: i32) -> (i32, i32) {
    %c0_i32 = arith.constant 0 : i32
    %c0_i32_0 = arith.constant 0 : i32
    %c0_i32_1 = arith.constant 0 : i32
    return %c0_i32, %c0_i32_0 : i32, i32
  }
  func.func @transform_3(%arg0: i32) -> (i32, i32, i32) {
    %c0_i32 = arith.constant 0 : i32
    %c0_i32_0 = arith.constant 0 : i32
    %c0_i32_1 = arith.constant 0 : i32
    return %arg0, %c0_i32, %c0_i32_0 : i32, i32, i32
  }
}

</mosaic_0001>

<bundles_post_ra>
// kernel: node_conv_forward.1
= control target key start
LH: loop header
LB: loop body
LE: loop exit
PB: predicated region body
PF: predicated region fallthrough
CT: control target
= control target key end

     0   :  { %s582_s12 = smov 0   ;;  %s655_s0 = inlined_call_operand.vmem [shape: bf16[2,4,342], index: 0, kind: input, shape index: {}]   ;;  %s656_s1 = inlined_call_operand.vmem [shape: bf16[4,36], index: 1, kind: input, shape index: {}]   ;;  %s657_s2 = inlined_call_operand.vmem [shape: f32[4,1], index: 2, kind: input, shape index: {}]   ;;  %s658_s3 = inlined_call_operand.vmem [shape: f32[2,4,288], index: 3, kind: output, shape index: {}]  }
   0x1 LB: > { %s491_s13 = sadd.s32 4294967295, %s548_s12   ;;  %p495_p0 = scmp.ge.s32.totalorder %s548_s12, 1  ;;  %s548_s12 = sphi %s582_s12, %s13_s12  }
   0x2   : > { %p137_p1 = scmp.lt.s32.totalorder %s548_s12, 3 }
   0x4   : > { %p138_p2 = pnand %p495_p0, %p137_p1 }
   0x5   : > { %p161_p3 = scmp.lt.s32.totalorder (!%p138_p2), %s491_s13, 1  ;;  %v180_v0 = vlaneseq (!%p138_p2)  ;;  %v550_v1 = vmov (!%p138_p2), 1983009808   ;;  %s551_s18 = smov (!%p138_p2), 126   ;;  %v553_v11 = vmov (!%p138_p2), 0.0   ;;  %v558_v18 = vmov (!%p138_p2), 0  }
   0x6   : > { %141 = sbr.rel (%p138_p2) target bundleno = 404 (0x194), region = 32  ;;  %v178_v2 = vunpack.c.l.s4 (!%p138_p2), %v550_v1  ;;  %s552_s19 = smov (!%p138_p2), 127   ;;  %507 = vmatprep.subr.bf16.mxu1 (!%p138_p2), %v553_v11  ;;  %377 = vmatprep.mubr.bf16.mxu0 (!%p138_p2), %v558_v18  ;;  %vm559_vm0 = vmmov (!%p138_p2), 0   ;;  %v173_v19 = vld [vmem:[%s657_s2] sm:$0xf] (!%p138_p2)  ;;  %vm207_vm1 = vcmask (!%p138_p2), 1039360  }
   0x7   : > { %v181_v3 = vshrl.u32 (!%p138_p2), %v180_v0, 7  ;;  %s554_s20 = smov (!%p138_p2), 110   ;;  %s555_s21 = smov (!%p138_p2), 109   ;;  %513 = vmatprep.mubr.msk.bf16.mxu1 (!%p138_p2), %vm559_vm0, %v553_v11  ;;  %539 = vset.pattern.permute.xlu0 (!%p138_p2), %v558_v18  ;;  %vm276_vm2 = vcmask (!%p138_p2), 1041408   ;;  %vm228_vm3 = vcmask (!%p138_p2), 900096   ;;  %vm218_vm4 = vcmask (!%p138_p2), 1031168  }
   0x8   : > { %v179_v4 = vunpack.c.0.s8 (!%p138_p2), %v178_v2  ;;  %s556_s22 = smov (!%p138_p2), 108   ;;  %s557_s23 = smov (!%p138_p2), 92   ;;  %vm293_vm5 = vcmask (!%p138_p2), 1045504   ;;  %vm286_vm6 = vcmask (!%p138_p2), 1043456   ;;  %vm246_vm7 = vcmask (!%p138_p2), 883712  }
   0x9   : > { %s560_s24 = smov (!%p138_p2), 91   ;;  %s561_s25 = smov (!%p138_p2), 90   ;;  %vm255_vm8 = vcmask (!%p138_p2), 752640   ;;  %vm237_vm9 = vcmask (!%p138_p2), 891904   ;;  %vm264_vm10 = vcmask (!%p138_p2), 744448   ;;  %vm273_vm11 = vcmask (!%p138_p2), 736256  }
   0xa   : > { %v182_v5 = vsub.s32 (!%p138_p2), %v179_v4, %v181_v3  ;;  %vm332_vm12 = vcmask (!%p138_p2), 293888   ;;  %vm434_vm13 = vcmask (!%p138_p2), 257024  }
   0xd   : > { %s660_s13 = smov (!%p161_p3, %s491_s13), 1 }
   0xe   : > { %s517_s14 = smul.u32 6, %s660_s13 }
   0xf   : > { %s518_s30 = smul.u32 12, %s660_s13 }
  0x10   : > { %s165_s17 = scalar_lea.vmem %s655_s0, %s517_s14 }
  0x11   : > { %v174_v6 = vld [vmem:[%s165_s17] sm:$0x3f]  ;;  %s170_s6 = scalar_lea.vmem %s658_s3, %s518_s30 }
  0x12   : > { %v596_v7 = vrot.slane %v174_v6, %v182_v5  ;;  %v192_v8 = vcombine.low %v174_v6, %v174_v6  ;;  %v176_v10 = vcombine.high %v174_v6, %v174_v6 }
  0x14   : > { %214 = vrot.lane.b32.xlu1 %v596_v7, %s551_s18  ;;  %205 = vrot.lane.b32.xlu0 %v596_v7, %s552_s19  ;;  %v199_v9 = vrot.slane %v192_v8, %v182_v5  ;;  %v210_v13 = vcombine.low %v596_v7, %v596_v7  ;;  %v190_v14 = vrot.slane %v176_v10, %v182_v5 }
  0x15   : > { %v191_v16 = vcombine.high %v596_v7, %v596_v7 }
  0x16   : > { %v200_v12 = vcombine.high %v199_v9, %v199_v9  ;;  %v211_v15 = vcombine.low %v190_v14, %v190_v14  ;;  %v221_v17 = vcombine.low %v199_v9, %v199_v9 }
  0x18   : > { %201 = vrot.lane.b32.xlu1 %v199_v9, %s552_s19  ;;  %224 = vrot.lane.b32.xlu0 %v199_v9, %s554_s20 }
  0x1c   : > { %203 = vrot.lane.b32.xlu0 %v200_v12, %s552_s19  ;;  %212 = vrot.lane.b32.xlu1 %v210_v13, %s551_s18 }
  0x20   : > { %226 = vrot.lane.b32.xlu1 %v210_v13, %s554_s20  ;;  %216 = vrot.lane.b32.xlu0 %v211_v15, %s551_s18 }
  0x24   : > { %233 = vrot.lane.b32.xlu1 %v191_v16, %s555_s21  ;;  %222 = vrot.lane.b32.xlu0 %v221_v17, %s554_s20 }
  0x28   : > { %242 = vrot.lane.b32.xlu1 %v200_v12, %s556_s22  ;;  %235 = vrot.lane.b32.xlu0 %v190_v14, %s555_s21 }
  0x2c   : > { %231 = vrot.lane.b32.xlu1 %v596_v7, %s555_s21  ;;  %244 = vrot.lane.b32.xlu0 %v596_v7, %s556_s22 }
  0x30   : > { %251 = vrot.lane.b32.xlu1 %v596_v7, %s557_s23  ;;  %240 = vrot.lane.b32.xlu0 %v199_v9, %s556_s22 }
  0x34   : > { %249 = vrot.lane.b32.xlu1 %v210_v13, %s557_s23  ;;  %253 = vrot.lane.b32.xlu0 %v211_v15, %s557_s23 }
  0x38   : > { %262 = vrot.lane.b32.xlu1 %v210_v13, %s560_s24  ;;  %260 = vrot.lane.b32.xlu0 %v199_v9, %s560_s24 }
  0x3c   : > { %267 = vrot.lane.b32.xlu1 %v596_v7, %s561_s25  ;;  %258 = vrot.lane.b32.xlu0 %v221_v17, %s560_s24 }
  0x40   : > { %271 = vrot.lane.b32.xlu1 %v190_v14, %s561_s25  ;;  %269 = vrot.lane.b32.xlu0 %v191_v16, %s561_s25 }
  0x44   : > { %329 = vperm.xlu0 %539, %v173_v19  }
  0x86   : > { %v215_v20 = vpop.permute.xlu1 %214  ;;  %v206_v21 = vpop.permute.xlu0 %205 }
  0x87   : > { %v285_v28 = vsel %vm276_vm2, %v190_v14, %v206_v21 }
  0x8a   : > { %v202_v22 = vpop.permute.xlu1 %201  ;;  %v225_v23 = vpop.permute.xlu0 %224 }
  0x8e   : > { %v204_v24 = vpop.permute.xlu0 %203  ;;  %v213_v25 = vpop.permute.xlu1 %212 }
  0x8f   : > { %v209_v26 = vsel %vm207_vm1, %v204_v24, %v206_v21  ;;  %v208_v27 = vsel %vm207_vm1, %v202_v22, %v204_v24  ;;  %v219_v36 = vsel %vm218_vm4, %v213_v25, %v215_v20 }
  0x90   : > { %v282_v31 = vsel %vm276_vm2, %v191_v16, %v209_v26  ;;  %v279_v35 = vsel %vm276_vm2, %v596_v7, %v208_v27  ;;  %v172_v16 = vld [vmem:[%s656_s1] sm:$0x3] }
  0x91   : > { %v288_v43 = vsel %vm286_vm6, %v279_v35, %v219_v36 }
  0x92   : > { %v227_v29 = vpop.permute.xlu1 %226  ;;  %v217_v30 = vpop.permute.xlu0 %216 }
  0x93   : > { %v230_v32 = vsel %vm228_vm3, %v225_v23, %v227_v29  ;;  %v220_v33 = vsel %vm218_vm4, %v215_v20, %v217_v30  ;;  %v292_v34 = vsel %vm286_vm6, %v285_v28, %v217_v30 }
  0x94   : > { %v301_v37 = vsel %vm293_vm5, %v292_v34, %v227_v29  ;;  %v290_v38 = vsel %vm286_vm6, %v282_v31, %v220_v33 }
  0x95   : > { %508 = vmatpush3.bf16.msra.mxu1 %v301_v37  ;;  %v298_v39 = vsel %vm293_vm5, %v290_v38, %v230_v32 }
  0x96   : > { %v234_v40 = vpop.permute.xlu1 %233  ;;  %345 = vmatprep.subr.bf16.mxu0 %v298_v39  ;;  %v223_v41 = vpop.permute.xlu0 %222  ;;  %509 = vmatprep.subr.bf16.mxu1 %v553_v11 }
  0x97   : > { %v229_v42 = vsel %vm228_vm3, %v223_v41, %v225_v23 }
  0x98   : > { %v295_v44 = vsel %vm293_vm5, %v288_v43, %v229_v42 }
  0x99   : > { %346 = vmatpush1.bf16.msra.mxu0 %v295_v44 }
  0x9a   : > { %v243_v45 = vpop.permute.xlu1 %242  ;;  %v236_v46 = vpop.permute.xlu0 %235 }
  0x9b   : > { %v239_v55 = vsel %vm237_vm9, %v234_v40, %v236_v46 }
  0x9e   : > { %v232_v47 = vpop.permute.xlu1 %231  ;;  %v245_v48 = vpop.permute.xlu0 %244 }
  0x9f   : > { %v248_v53 = vsel %vm246_vm7, %v243_v45, %v245_v48  ;;  %v311_v56 = vsel %vm276_vm2, %v236_v46, %v245_v48  ;;  %v238_v3 = vsel %vm237_vm9, %v232_v47, %v234_v40 }
  0xa0   : > { %v308_v57 = vsel %vm276_vm2, %v239_v55, %v248_v53 }
  0xa2   : > { %v252_v49 = vpop.permute.xlu1 %251  ;;  %v241_v50 = vpop.permute.xlu0 %240 }
  0xa3   : > { %v247_v61 = vsel %vm246_vm7, %v241_v50, %v243_v45 }
  0xa4   : > { %v305_v4 = vsel %vm276_vm2, %v238_v3, %v247_v61 }
  0xa6   : > { %v250_v51 = vpop.permute.xlu1 %249  ;;  %v254_v52 = vpop.permute.xlu0 %253 }
  0xa7   : > { %v257_v54 = vsel %vm255_vm8, %v252_v49, %v254_v52  ;;  %v317_v58 = vsel %vm286_vm6, %v311_v56, %v254_v52  ;;  %v256_v1 = vsel %vm255_vm8, %v250_v51, %v252_v49 }
  0xa8   : > { %v315_v0 = vsel %vm286_vm6, %v308_v57, %v257_v54  ;;  %v313_v8 = vsel %vm286_vm6, %v305_v4, %v256_v1 }
  0xaa   : > { %v263_v59 = vpop.permute.xlu1 %262  ;;  %v261_v60 = vpop.permute.xlu0 %260 }
  0xab   : > { %v266_v62 = vsel %vm264_vm10, %v261_v60, %v263_v59  ;;  %v325_v63 = vsel %vm293_vm5, %v317_v58, %v263_v59 }
  0xac   : > { %510 = vmatpush3.bf16.msra.mxu1 %v325_v63  ;;  %v322_v2 = vsel %vm293_vm5, %v315_v0, %v266_v62 }
  0xad   : > { %347 = vmatprep.subr.bf16.mxu0 %v322_v2  ;;  %511 = vmatprep.subr.bf16.mxu1 %v553_v11 }
  0xae   : > { %v268_v5 = vpop.permute.xlu1 %267  ;;  %v259_v6 = vpop.permute.xlu0 %258 }
  0xaf   : > { %v265_v7 = vsel %vm264_vm10, %v259_v6, %v261_v60 }
  0xb0   : > { %v319_v9 = vsel %vm293_vm5, %v313_v8, %v265_v7 }
  0xb1   : > { %348 = vmatpush1.bf16.msra.mxu0 %v319_v9 }
  0xb2   : > { %v272_v10 = vpop.permute.xlu1 %271  ;;  %v270_v12 = vpop.permute.xlu0 %269 }
  0xb3   : > { %v343_v13 = vsel %vm276_vm2, %v272_v10, 0  ;;  %v274_v14 = vsel %vm273_vm11, %v268_v5, %v270_v12  ;;  %v275_v15 = vsel %vm273_vm11, %v270_v12, %v272_v10 }
  0xb4   : > { %498 = vmatprep.subr.msk.bf16.mxu0 %vm276_vm2, %v275_v15  ;;  %512 = vmatpush3.bf16.msra.mxu1 %v343_v13  ;;  %v337_v11 = vsel %vm276_vm2, %v274_v14, 0 }
  0xb5   : > { %350 = vmatpush1.bf16.msra.mxu0 %v337_v11 }
  0xb7   : > { %514 = vmatmul.mubr.msk.bf16.vlgmr.msra.gmra.mrb[0].mxu1 %vm332_vm12, %v172_v16 }
  0xb8   : > { %499 = vmatmul.mubr.msk.bf16.vlgmr.msra.gmra.mrb[0].mxu0 %vm332_vm12, %v172_v16 }
  0xc3   : > { %v330_v17 = vpop.permute.xlu0 %329 }
 0x18a   : > { %v420_v18 = vpop.f32.mrb[0].mxu1 }
 0x18b   : > { %v379_v19 = vpop.f32.mrb[0].mxu0  ;;  %v421_v20 = vadd.f32 %v420_v18, %v330_v17  ;;  %v515_v21 = vpop.f32.mrb[1].mxu1 }
 0x18c   : > { %v380_v22 = vadd.f32 %v379_v19, %v330_v17  ;;  %v381_v23 = vpop.f32.mrb[1].mxu0  ;;  %v423_v24 = vpop.f32.mrb[2].mxu1 }
 0x18d   : > { %v428_v25 = vmax.f32 %v421_v20, 0.0  ;;  %v382_v26 = vadd.f32 %v381_v23, %v330_v17  ;;  %v383_v27 = vpop.f32.mrb[2].mxu0  ;;  %v516_v28 = vpop.f32.mrb[3].mxu1 }
 0x18e   : > { %v426_v29 = vmax.f32 %v380_v22, 0.0  ;;  %v384_v30 = vpop.f32.mrb[3].mxu0 }
 0x18f   : > { %v427_v31 = vmax.f32 %v382_v26, 0.0  ;;  %435 = vst.msk [vmem:[%s170_s6 + $0x8] sm:$0xf] %vm434_vm13, %v428_v25 }
 0x191   : > { %v431_v32 = vcombine.low %v426_v29, %v427_v31 }
 0x193   : > { %433 = vst [vmem:[%s170_s6] sm:$0xff] %v431_v32 }
 0x194 PF: > { %s13_s12 = sadd.s32 1, %s548_s12  }
 0x195   : > { %p10_p4 = scmp.ge.s32.totalorder %s13_s12, 4  }
 0x197   :  { %12 = sbr.rel (!%p10_p4) target bundleno = 1 (0x1), region = 62 }

</bundles_post_ra>
